<compile_context>
chip_gen: v6e
topology: v6e:2x2x1
jax: 0.10.0
libtpu: 0.0.40
codegen_flags: <defaults>
</compile_context>

<pallas_src>
import functools
import math

import jax
import jax.numpy as jnp
from jax.experimental import pallas as pl
from jax.experimental.pallas import tpu as pltpu


def _round_up(v, m):
    return ((v + m - 1) // m) * m


# --------------------------------------------------------------------------------------
# Pallas kernel: fused (im2col) matmul + BN + [residual add] + [ReLU] (+ pre-ReLU copy)
# --------------------------------------------------------------------------------------
def _conv_matmul_kernel(x_ref, w_ref, scale_ref, bias_ref, *rest,
                        relu, add_identity, capture_prerelu):
    # x_ref: (tm, Kp) bf16   w_ref: (Kp, tn) bf16   scale/bias: (1, tn) f32
    # rest = ([identity_ref (tm, tn)], out_ref (tm, tn), [prerelu_ref (tm, tn) f32])
    idx = 0
    id_ref = None
    if add_identity:
        id_ref = rest[0]
        idx = 1
    o_ref = rest[idx]
    pre_ref = rest[idx + 1] if capture_prerelu else None

    acc = jnp.dot(x_ref[...], w_ref[...], preferred_element_type=jnp.float32)
    y = acc * scale_ref[...] + bias_ref[...]              # f32 epilogue (v5e-safe)
    if add_identity:
        y = y + id_ref[...].astype(jnp.float32)
    if capture_prerelu:
        pre_ref[...] = y.astype(pre_ref.dtype)
    if relu:
        y = jnp.maximum(y, 0.0)
    o_ref[...] = y.astype(o_ref.dtype)


# --------------------------------------------------------------------------------------
# Kernel wrapper
# --------------------------------------------------------------------------------------
@functools.partial(jax.jit, static_argnames=("relu", "capture_prerelu", "out_dtype"))
def fused_matmul(x2d, w2d, scale, bias, identity2d=None, *, relu, capture_prerelu,
                 out_dtype):
    """out = act((x2d @ w2d) * scale + bias [+ identity2d]).

    x2d: [M, K], w2d: [K, N], scale/bias: [N], identity2d: [M, N] or None.
    Returns (out [M, N] out_dtype, prerelu [M, N] f32 or None).
    """
    M, K = x2d.shape
    _, N = w2d.shape
    add_identity = identity2d is not None

    # lane/sublane-aligned padding: K -> multiple of 128, N -> >=128 multiple of 128
    Kp = _round_up(K, 128)
    Np = _round_up(N, 128)

    # tile sizes (bf16 operands); tm capped for large K so double-buffered tiles fit
    # comfortably in scoped VMEM on v5e (16 MiB default) and v7x (64 MiB physical).
    tn = 256 if (Np % 256 == 0) else 128
    tm_cap = 512 if Kp <= 1536 else 256
    tm = min(tm_cap, _round_up(M, 128))
    Mp = _round_up(M, tm)

    xb = x2d.astype(jnp.bfloat16)
    wb = w2d.astype(jnp.bfloat16)
    if Kp != K:
        xb = jnp.pad(xb, ((0, 0), (0, Kp - K)))
        wb = jnp.pad(wb, ((0, Kp - K), (0, 0)))
    if Mp != M:
        xb = jnp.pad(xb, ((0, Mp - M), (0, 0)))
    if Np != N:
        wb = jnp.pad(wb, ((0, 0), (0, Np - N)))
        scale = jnp.pad(scale, (0, Np - N))
        bias = jnp.pad(bias, (0, Np - N))
    scale2 = scale.reshape(1, Np).astype(jnp.float32)
    bias2 = bias.reshape(1, Np).astype(jnp.float32)

    in_specs = [
        pl.BlockSpec((tm, Kp), lambda i, j: (i, 0)),
        pl.BlockSpec((Kp, tn), lambda i, j: (0, j)),
        pl.BlockSpec((1, tn), lambda i, j: (0, j)),
        pl.BlockSpec((1, tn), lambda i, j: (0, j)),
    ]
    operands = [xb, wb, scale2, bias2]
    if add_identity:
        idp = identity2d
        if Mp != M or Np != N:
            idp = jnp.pad(idp, ((0, Mp - M), (0, Np - N)))
        in_specs.append(pl.BlockSpec((tm, tn), lambda i, j: (i, j)))
        operands.append(idp)

    out_shapes = [jax.ShapeDtypeStruct((Mp, Np), out_dtype)]
    out_specs = [pl.BlockSpec((tm, tn), lambda i, j: (i, j))]
    if capture_prerelu:
        out_shapes.append(jax.ShapeDtypeStruct((Mp, Np), jnp.float32))
        out_specs.append(pl.BlockSpec((tm, tn), lambda i, j: (i, j)))

    kernel = functools.partial(_conv_matmul_kernel, relu=relu,
                               add_identity=add_identity,
                               capture_prerelu=capture_prerelu)
    outs = pl.pallas_call(
        kernel,
        out_shape=tuple(out_shapes),
        grid=(Mp // tm, Np // tn),
        in_specs=in_specs,
        out_specs=tuple(out_specs),
        compiler_params=pltpu.CompilerParams(
            dimension_semantics=("parallel", "parallel")),
    )(*operands)

    y = outs[0]
    pre = outs[1] if capture_prerelu else None
    if Mp != M or Np != N:
        y = y[:M, :N]
        pre = pre[:M, :N] if pre is not None else None
    return y, pre


# --------------------------------------------------------------------------------------
# Plain-JAX glue: im2col patches, maxpool, bilinear align_corners=True resize
# --------------------------------------------------------------------------------------
def extract_patches(x, kh, kw, stride, padding):
    """x: [B, H, W, C] -> patches [B, Ho, Wo, kh*kw*C] (window order: dy, dx, c)."""
    B, H, W, C = x.shape
    if padding > 0:
        x = jnp.pad(x, ((0, 0), (padding, padding), (padding, padding), (0, 0)))
    Ho = (H + 2 * padding - kh) // stride + 1
    Wo = (W + 2 * padding - kw) // stride + 1
    cols = []
    for dy in range(kh):
        for dx in range(kw):
            cols.append(x[:, dy:dy + stride * (Ho - 1) + 1:stride,
                          dx:dx + stride * (Wo - 1) + 1:stride, :])
    return jnp.concatenate(cols, axis=-1), Ho, Wo


def maxpool_3x3_s2_p1(x):
    """PyTorch MaxPool2d(3, stride=2, padding=1) on NHWC."""
    B, H, W, C = x.shape
    xp = jnp.pad(x, ((0, 0), (1, 1), (1, 1), (0, 0)), constant_values=-jnp.inf)
    Ho = (H + 2 - 3) // 2 + 1
    Wo = (W + 2 - 3) // 2 + 1
    out = None
    for dy in range(3):
        for dx in range(3):
            v = xp[:, dy:dy + 2 * (Ho - 1) + 1:2, dx:dx + 2 * (Wo - 1) + 1:2, :]
            out = v if out is None else jnp.maximum(out, v)
    return out


def _interp_matrix(out_size, in_size):
    """Row-interpolation matrix matching F.interpolate(bilinear, align_corners=True)."""
    if in_size == 1:
        return jnp.ones((out_size, 1), jnp.float32)
    if out_size == 1:
        pos = jnp.zeros((1,), jnp.float32)
    else:
        pos = jnp.arange(out_size, dtype=jnp.float32) * (in_size - 1) / (out_size - 1)
    lo = jnp.clip(jnp.floor(pos).astype(jnp.int32), 0, in_size - 2)
    frac = pos - lo.astype(jnp.float32)
    m = jnp.zeros((out_size, in_size), jnp.float32)
    rows = jnp.arange(out_size)
    m = m.at[rows, lo].add(1.0 - frac)
    m = m.at[rows, lo + 1].add(frac)
    return m


def bilinear_resize_nhwc(x, size):
    B, H, W, C = x.shape
    mh = _interp_matrix(size, H)
    mw = _interp_matrix(size, W)
    x = x.astype(jnp.float32)
    y = jnp.einsum('ih,bhwc->biwc', mh, x)
    y = jnp.einsum('jw,biwc->bijc', mw, y)
    return y


# --------------------------------------------------------------------------------------
# Conv / bottleneck wrappers (all hot-path compute goes through fused_matmul)
# --------------------------------------------------------------------------------------
def conv_bn(x, w_hwio, bn, stride, padding, relu, identity=None,
            capture_prerelu=False, out_dtype=jnp.bfloat16):
    kh, kw, cin, cout = w_hwio.shape
    B = x.shape[0]
    if kh == 1 and kw == 1 and padding == 0:
        if stride > 1:
            x = x[:, ::stride, ::stride, :]
        Ho, Wo = x.shape[1], x.shape[2]
        x2d = x.reshape(B * Ho * Wo, cin)
    else:
        patches, Ho, Wo = extract_patches(x.astype(jnp.bfloat16), kh, kw, stride, padding)
        x2d = patches.reshape(B * Ho * Wo, kh * kw * cin)
    w2d = w_hwio.reshape(kh * kw * cin, cout)
    scale = bn["gamma"] * jax.lax.rsqrt(bn["var"] + 1e-5)
    bias = bn["beta"] - bn["mean"] * scale
    id2d = identity.reshape(B * Ho * Wo, cout) if identity is not None else None
    y, pre = fused_matmul(x2d, w2d, scale, bias, id2d, relu=relu,
                          capture_prerelu=capture_prerelu, out_dtype=out_dtype)
    y = y.reshape(B, Ho, Wo, cout)
    pre = pre.reshape(B, Ho, Wo, cout) if pre is not None else None
    return y, pre


def bottleneck(x, p, capture):
    """torchvision Bottleneck (expansion=4, stride on 3x3 conv); residual + ReLU fused
    into the conv3 epilogue; optionally also emits the pre-ReLU sum (hyperpixel)."""
    out, _ = conv_bn(x, p["conv1_w"], p["bn1"], stride=1, padding=0, relu=True)
    out, _ = conv_bn(out, p["conv2_w"], p["bn2"], stride=p["stride"], padding=1, relu=True)
    if "down_w" in p:
        identity, _ = conv_bn(x, p["down_w"], p["down_bn"], stride=p["stride"],
                              padding=0, relu=False)
    else:
        identity = x
    post, pre = conv_bn(out, p["conv3_w"], p["bn3"], stride=1, padding=0, relu=True,
                        identity=identity, capture_prerelu=capture)
    return post, pre


# --------------------------------------------------------------------------------------
# Deterministic parameter construction (synthetic; shapes follow resnet101 Bottleneck)
# --------------------------------------------------------------------------------------
class KeyGen:
    def __init__(self, seed):
        self._key = jax.random.PRNGKey(seed)
        self._n = 0

    def __call__(self):
        self._n += 1
        return jax.random.fold_in(self._key, self._n)


def make_conv(kg, kh, kw, cin, cout):
    std = 1.0 / math.sqrt(kh * kw * cin)
    return (std * jax.random.normal(kg(), (kh, kw, cin, cout))).astype(jnp.float32)


def make_bn(kg, c):
    return {
        "gamma": (1.0 + 0.01 * jax.random.normal(kg(), (c,))).astype(jnp.float32),
        "beta": (0.01 * jax.random.normal(kg(), (c,))).astype(jnp.float32),
        "mean": (0.01 * jax.random.normal(kg(), (c,))).astype(jnp.float32),
        "var": (1.0 + 0.01 * jnp.abs(jax.random.normal(kg(), (c,)))).astype(jnp.float32),
    }


def init_params(seed=0):
    kg = KeyGen(seed)
    layers_cfg = [(64, 3, 1), (128, 4, 2), (256, 23, 2), (512, 3, 2)]  # resnet101
    params = {
        "conv1_w": make_conv(kg, 7, 7, 3, 64),
        "bn1": make_bn(kg, 64),
        "layers": [],
    }
    inplanes = 64
    for planes, num_blocks, stride in layers_cfg:
        blocks = []
        for b in range(num_blocks):
            s = stride if b == 0 else 1
            blk = {
                "stride": s,
                "conv1_w": make_conv(kg, 1, 1, inplanes, planes),
                "bn1": make_bn(kg, planes),
                "conv2_w": make_conv(kg, 3, 3, planes, planes),
                "bn2": make_bn(kg, planes),
                "conv3_w": make_conv(kg, 1, 1, planes, planes * 4),
                "bn3": make_bn(kg, planes * 4),
            }
            if b == 0:  # stride != 1 or inplanes != planes*4 -> downsample branch
                blk["down_w"] = make_conv(kg, 1, 1, inplanes, planes * 4)
                blk["down_bn"] = make_bn(kg, planes * 4)
            blocks.append(blk)
            inplanes = planes * 4
        params["layers"].append(blocks)
    return params


# --------------------------------------------------------------------------------------
# Forward pass (mirrors FeatureExtractionHyperPixel.forward)
# --------------------------------------------------------------------------------------
def hyperpixel_forward(img_nchw, params, hyperpixel_ids, feature_size):
    hyperpixel_ids = set(int(i) for i in hyperpixel_ids)
    x = jnp.transpose(img_nchw, (0, 2, 3, 1)).astype(jnp.float32)  # NCHW -> NHWC

    # stem: conv1 + bn1 + relu + maxpool
    feat, _ = conv_bn(x, params["conv1_w"], params["bn1"], stride=2, padding=3, relu=True)
    feat = maxpool_3x3_s2_p1(feat)

    feats = []
    if 0 in hyperpixel_ids:
        feats.append(feat.astype(jnp.float32))

    hid = 0
    for layer_blocks in params["layers"]:
        for blk in layer_blocks:
            capture = (hid + 1) in hyperpixel_ids
            feat, pre = bottleneck(feat, blk, capture)  # pre = sum before final ReLU
            if capture:
                feats.append(pre)
            hid += 1

    outs = []
    for f in feats:
        r = bilinear_resize_nhwc(f, feature_size)       # bilinear, align_corners=True
        outs.append(jnp.transpose(r, (0, 3, 1, 2)))     # NHWC -> NCHW, f32
    return outs


if __name__ == "__main__":
    key = jax.random.PRNGKey(0)
    # Small input consistent with forward(): img [B, 3, H, W]
    img = jax.random.normal(key, (2, 3, 16, 16), dtype=jnp.float32)
    hyperpixel_ids = (0, 2, 5, 15, 33)   # stem + one block from each of layer1..layer4
    feature_size = 8

    params = init_params(seed=0)
    feats = hyperpixel_forward(img, params, hyperpixel_ids, feature_size)
    for f in feats:
        jax.block_until_ready(f)

    expected = [(2, 64, 8, 8), (2, 256, 8, 8), (2, 512, 8, 8),
                (2, 1024, 8, 8), (2, 2048, 8, 8)]
    got = [tuple(int(d) for d in f.shape) for f in feats]
    assert got == expected, (got, expected)
    assert all(bool(jnp.all(jnp.isfinite(f))) for f in feats)
    print("KERNEL_OK")
</pallas_src>

<mosaic_0001>
module attributes {stable_mosaic.version = 11 : i64} {
  func.func @_conv_matmul_kernel(%arg0: i32, %arg1: i32, %arg2: memref<128x256xbf16, #tpu.memory_space<vmem>>, %arg3: memref<256x128xbf16, #tpu.memory_space<vmem>>, %arg4: memref<1x128xf32, #tpu.memory_space<vmem>>, %arg5: memref<1x128xf32, #tpu.memory_space<vmem>>, %arg6: memref<128x128xbf16, #tpu.memory_space<vmem>>) attributes {dimension_semantics = [#tpu.dimension_semantics<parallel>, #tpu.dimension_semantics<parallel>], iteration_bounds = array<i64: 1, 1>, scalar_prefetch = 0 : i64, scratch_operands = 0 : i64, tpu.core_type = #tpu.core_type<tc>, window_params = [{transform_indices = @transform_0, window_bounds = array<i64: 128, 256>}, {transform_indices = @transform_1, window_bounds = array<i64: 256, 128>}, {transform_indices = @transform_2, window_bounds = array<i64: 1, 128>}, {transform_indices = @transform_3, window_bounds = array<i64: 1, 128>}, {transform_indices = @transform_4, window_bounds = array<i64: 128, 128>}]} {
    %c0 = arith.constant 0 : index
    %c0_0 = arith.constant 0 : index
    %0 = vector.load %arg2[%c0, %c0_0] : memref<128x256xbf16, #tpu.memory_space<vmem>>, vector<128x256xbf16>
    %c0_1 = arith.constant 0 : index
    %c0_2 = arith.constant 0 : index
    %1 = vector.load %arg3[%c0_1, %c0_2] : memref<256x128xbf16, #tpu.memory_space<vmem>>, vector<256x128xbf16>
    %cst = arith.constant dense<0.000000e+00> : vector<128x128xf32>
    %2 = tpu.matmul %0, %1, %cst {dimension_numbers = #tpu.dot_dimension_numbers<[1], [0], [0], [1], [0, 0, 1, 1], [], []>} : vector<128x256xbf16>, vector<256x128xbf16>, vector<128x128xf32> -> vector<128x128xf32>
    %c0_3 = arith.constant 0 : index
    %c0_4 = arith.constant 0 : index
    %3 = vector.load %arg4[%c0_3, %c0_4] : memref<1x128xf32, #tpu.memory_space<vmem>>, vector<1x128xf32>
    %4 = vector.broadcast %3 : vector<1x128xf32> to vector<128x128xf32>
    %5 = arith.mulf %2, %4 : vector<128x128xf32>
    %c0_5 = arith.constant 0 : index
    %c0_6 = arith.constant 0 : index
    %6 = vector.load %arg5[%c0_5, %c0_6] : memref<1x128xf32, #tpu.memory_space<vmem>>, vector<1x128xf32>
    %7 = vector.broadcast %6 : vector<1x128xf32> to vector<128x128xf32>
    %8 = arith.addf %5, %7 : vector<128x128xf32>
    %cst_7 = arith.constant 0.000000e+00 : f32
    %9 = vector.broadcast %cst_7 : f32 to vector<128x128xf32>
    %10 = arith.maximumf %8, %9 : vector<128x128xf32>
    %11 = arith.truncf %10 : vector<128x128xf32> to vector<128x128xbf16>
    %c0_8 = arith.constant 0 : index
    %c0_9 = arith.constant 0 : index
    %12 = vector.load %arg6[%c0_8, %c0_9] : memref<128x128xbf16, #tpu.memory_space<vmem>>, vector<128x128xbf16>
    tpu.vector_store %arg6[%c0_8, %c0_9], %11 {strides = array<i32>} : memref<128x128xbf16, #tpu.memory_space<vmem>>, vector<128x128xbf16>,
    return
  }
  func.func @transform_0(%arg0: i32, %arg1: i32) -> (i32, i32) {
    %c0_i32 = arith.constant 0 : i32
    %c0_i32_0 = arith.constant 0 : i32
    return %arg0, %c0_i32 : i32, i32
  }
  func.func @transform_1(%arg0: i32, %arg1: i32) -> (i32, i32) {
    %c0_i32 = arith.constant 0 : i32
    %c0_i32_0 = arith.constant 0 : i32
    return %c0_i32, %arg1 : i32, i32
  }
  func.func @transform_2(%arg0: i32, %arg1: i32) -> (i32, i32) {
    %c0_i32 = arith.constant 0 : i32
    %c0_i32_0 = arith.constant 0 : i32
    return %c0_i32, %arg1 : i32, i32
  }
  func.func @transform_3(%arg0: i32, %arg1: i32) -> (i32, i32) {
    %c0_i32 = arith.constant 0 : i32
    %c0_i32_0 = arith.constant 0 : i32
    return %c0_i32, %arg1 : i32, i32
  }
  func.func @transform_4(%arg0: i32, %arg1: i32) -> (i32, i32) {
    %c0_i32 = arith.constant 0 : i32
    return %arg0, %arg1 : i32, i32
  }
}

</mosaic_0001>

<bundles_post_ra>
// kernel: fused_matmul.1
= control target key start
LH: loop header
LB: loop body
LE: loop exit
PB: predicated region body
PF: predicated region fallthrough
CT: control target
= control target key end

     0   :  { %s905_s1 = inlined_call_operand.vmem [shape: bf16[256,128], index: 1, kind: input, shape index: {}]   ;;  %s906_s0 = inlined_call_operand.vmem [shape: bf16[128,256], index: 0, kind: input, shape index: {}]   ;;  %s907_s2 = inlined_call_operand.vmem [shape: f32[1,128], index: 2, kind: input, shape index: {}]   ;;  %s908_s3 = inlined_call_operand.vmem [shape: f32[1,128], index: 3, kind: input, shape index: {}]   ;;  %s909_s4 = inlined_call_operand.vmem [shape: bf16[128,128], index: 4, kind: output, shape index: {}]  }
   0x1   :  { %v678_v0 = vld [vmem:[%s905_s1 + $0x78] sm:$0xff]   ;;  %v680_v2 = vld [vmem:[%s905_s1 + $0x70] sm:$0xff]   ;;  %v682_v4 = vld [vmem:[%s905_s1 + $0x68] sm:$0xff]  }
   0x2   :  { %v679_v1 = vld [vmem:[%s905_s1 + $0x38] sm:$0xff]   ;;  %598 = vmatprep.subr.bf16.mxu0 %v678_v0  ;;  %662 = vmatprep.subr.bf16.mxu1 %v678_v0  ;;  %v681_v3 = vld [vmem:[%s905_s1 + $0x30] sm:$0xff]   ;;  %v683_v5 = vld [vmem:[%s905_s1 + $0x28] sm:$0xff]  }
   0x3   :  { %599 = vmatpush3.bf16.msra.mxu0 %v679_v1  ;;  %670 = vmatpush3.bf16.msra.mxu1 %v679_v1  ;;  %v684_v6 = vld [vmem:[%s905_s1 + $0x60] sm:$0xff]   ;;  %v686_v8 = vld [vmem:[%s905_s1 + $0x58] sm:$0xff]   ;;  %v688_v10 = vld [vmem:[%s905_s1 + $0x50] sm:$0xff]  }
   0x4   :  { %600 = vmatprep.subr.bf16.mxu0 %v680_v2  ;;  %663 = vmatprep.subr.bf16.mxu1 %v680_v2  ;;  %v685_v7 = vld [vmem:[%s905_s1 + $0x20] sm:$0xff]   ;;  %v687_v9 = vld [vmem:[%s905_s1 + $0x18] sm:$0xff]   ;;  %v689_v13 = vld [vmem:[%s905_s1 + $0x10] sm:$0xff]  }
   0x5   :  { %v696_v11 = vld [vmem:[%s906_s0 + $0x4] ss:$8 sps:$4 sm:$0xff]   ;;  %v694_v18 = vld [vmem:[%s906_s0] ss:$8 sps:$4 sm:$0xff]   ;;  %v700_v20 = vld [vmem:[%s906_s0 + $0x14] ss:$8 sps:$4 sm:$0xff]  }
   0x6   :  { %v699_v12 = vld [vmem:[%s906_s0 + $0x44] ss:$8 sps:$4 sm:$0xff]   ;;  %274 = vmatprep.mubr.bf16.mxu0 %v696_v11  ;;  %v697_v19 = vld [vmem:[%s906_s0 + $0x40] ss:$8 sps:$4 sm:$0xff]   ;;  %v702_v21 = vld [vmem:[%s906_s0 + $0x54] ss:$8 sps:$4 sm:$0xff]  }
   0x7   :  { %601 = vmatpush3.bf16.msra.mxu0 %v681_v3  ;;  %671 = vmatpush3.bf16.msra.mxu1 %v681_v3  ;;  %v690_v14 = vld [vmem:[%s905_s1 + $0x48] sm:$0xff]   ;;  %v692_v16 = vld [vmem:[%s905_s1 + $0x40] sm:$0xff]   ;;  %v704_v22 = vld [vmem:[%s906_s0 + $0x10] ss:$8 sps:$4 sm:$0xff]  }
   0x8   :  { %602 = vmatprep.subr.bf16.mxu0 %v682_v4  ;;  %664 = vmatprep.subr.bf16.mxu1 %v682_v4  ;;  %v691_v15 = vld [vmem:[%s905_s1 + $0x8] sm:$0xff]   ;;  %v693_v17 = vld [vmem:[%s905_s1] sm:$0xff]   ;;  %v705_v23 = vld [vmem:[%s906_s0 + $0x50] ss:$8 sps:$4 sm:$0xff]  }
   0x9   :  { %306 = vmatprep.mubr.bf16.mxu1 %v699_v12  ;;  %v706_v24 = vld [vmem:[%s906_s0 + $0x24] ss:$8 sps:$4 sm:$0xff]   ;;  %v710_v26 = vld [vmem:[%s906_s0 + $0x20] ss:$8 sps:$4 sm:$0xff]   ;;  %v712_v28 = vld [vmem:[%s906_s0 + $0x34] ss:$8 sps:$4 sm:$0xff]  }
   0xa   :  { %v708_v25 = vld [vmem:[%s906_s0 + $0x64] ss:$8 sps:$4 sm:$0xff]   ;;  %v711_v27 = vld [vmem:[%s906_s0 + $0x60] ss:$8 sps:$4 sm:$0xff]   ;;  %v714_v29 = vld [vmem:[%s906_s0 + $0x74] ss:$8 sps:$4 sm:$0xff]  }
   0xb   :  { %603 = vmatpush3.bf16.msra.mxu0 %v683_v5  ;;  %672 = vmatpush3.bf16.msra.mxu1 %v683_v5  ;;  %v716_v30 = vld [vmem:[%s906_s0 + $0x30] ss:$8 sps:$4 sm:$0xff]   ;;  %v842_v35 = vld [vmem:[%s907_s2] ss:$0 sm:$0xff] }
   0xc   :  { %604 = vmatprep.subr.bf16.mxu0 %v684_v6  ;;  %665 = vmatprep.subr.bf16.mxu1 %v684_v6  ;;  %v717_v31 = vld [vmem:[%s906_s0 + $0x70] ss:$8 sps:$4 sm:$0xff]   ;;  %v849_v43 = vld [vmem:[%s908_s3] ss:$0 sm:$0xff] }
   0xf   :  { %605 = vmatpush3.bf16.msra.mxu0 %v685_v7  ;;  %673 = vmatpush3.bf16.msra.mxu1 %v685_v7 }
  0x10   :  { %606 = vmatprep.subr.bf16.mxu0 %v686_v8  ;;  %666 = vmatprep.subr.bf16.mxu1 %v686_v8 }
  0x13   :  { %607 = vmatpush3.bf16.msra.mxu0 %v687_v9  ;;  %674 = vmatpush3.bf16.msra.mxu1 %v687_v9 }
  0x14   :  { %608 = vmatprep.subr.bf16.mxu0 %v688_v10  ;;  %667 = vmatprep.subr.bf16.mxu1 %v688_v10 }
  0x17   :  { %609 = vmatpush3.bf16.msra.mxu0 %v689_v13  ;;  %675 = vmatpush3.bf16.msra.mxu1 %v689_v13 }
  0x18   :  { %610 = vmatprep.subr.bf16.mxu0 %v690_v14  ;;  %668 = vmatprep.subr.bf16.mxu1 %v690_v14 }
  0x1b   :  { %611 = vmatpush3.bf16.msra.mxu0 %v691_v15  ;;  %676 = vmatpush3.bf16.msra.mxu1 %v691_v15 }
  0x1c   :  { %612 = vmatprep.subr.bf16.mxu0 %v692_v16  ;;  %669 = vmatprep.subr.bf16.mxu1 %v692_v16 }
  0x1f   :  { %613 = vmatpush3.bf16.msra.mxu0 %v693_v17  ;;  %677 = vmatpush3.bf16.msra.mxu1 %v693_v17 }
  0x22   :  { %275 = vmatmul.mubr.bf16.vlgmr.msra.gmra.mxu0 %v694_v18  ;;  %307 = vmatmul.mubr.bf16.vlgmr.msra.gmra.mxu1 %v697_v19 }
  0x23   :  { %282 = vmatprep.mubr.bf16.mxu0 %v700_v20  ;;  %314 = vmatprep.mubr.bf16.mxu1 %v702_v21 }
  0x2a   :  { %283 = vmatmul.mubr.bf16.gmra.mxu0 %v704_v22  ;;  %315 = vmatmul.mubr.bf16.gmra.mxu1 %v705_v23 }
  0x2b   :  { %290 = vmatprep.mubr.bf16.mxu0 %v706_v24  ;;  %322 = vmatprep.mubr.bf16.mxu1 %v708_v25 }
  0x32   :  { %291 = vmatmul.mubr.bf16.gmra.mxu0 %v710_v26  ;;  %323 = vmatmul.mubr.bf16.gmra.mxu1 %v711_v27 }
  0x33   :  { %298 = vmatprep.mubr.bf16.mxu0 %v712_v28  ;;  %330 = vmatprep.mubr.bf16.mxu1 %v714_v29 }
  0x3a   :  { %299 = vmatmul.mubr.bf16.gmra.mxu0 %v716_v30  ;;  %331 = vmatmul.mubr.bf16.gmra.mxu1 %v717_v31 }
  0xe2   :  { %v614_v32 = vpop.f32.mrf.mxu0  ;;  %v638_v33 = vpop.f32.mrf.mxu1 }
  0xe4   :  { %v615_v34 = vpop.f32.mrf.mxu0  ;;  %v639_v36 = vpop.f32.mrf.mxu1 }
  0xe5   :  { %v616_v37 = vadd.f32 %v615_v34, %v614_v32  ;;  %v640_v38 = vadd.f32 %v639_v36, %v638_v33 }
  0xe6   :  { %v617_v39 = vpop.f32.mrf.mxu0  ;;  %v641_v40 = vpop.f32.mrf.mxu1 }
  0xe7   :  { %v346_v41 = vmul.f32 %v616_v37, %v842_v35  ;;  %v354_v42 = vmul.f32 %v640_v38, %v842_v35 }
  0xe8   :  { %v618_v44 = vpop.f32.mrf.mxu0  ;;  %v642_v45 = vpop.f32.mrf.mxu1 }
  0xe9   :  { %v619_v46 = vadd.f32 %v618_v44, %v617_v39  ;;  %v643_v47 = vadd.f32 %v642_v45, %v641_v40  ;;  %v369_v50 = vadd.f32 %v849_v43, %v346_v41  ;;  %v377_v51 = vadd.f32 %v849_v43, %v354_v42 }
  0xea   :  { %v620_v48 = vpop.f32.mrf.mxu0  ;;  %v644_v49 = vpop.f32.mrf.mxu1 }
  0xeb   :  { %v347_v52 = vmul.f32 %v619_v46, %v842_v35  ;;  %v355_v53 = vmul.f32 %v643_v47, %v842_v35  ;;  %v385_v62 = vmax.f32 %v369_v50, 0.0  ;;  %v393_v63 = vmax.f32 %v377_v51, 0.0 }
  0xec   :  { %v621_v54 = vpop.f32.mrf.mxu0  ;;  %v645_v55 = vpop.f32.mrf.mxu1 }
  0xed   :  { %v370_v56 = vadd.f32 %v849_v43, %v347_v52  ;;  %v378_v57 = vadd.f32 %v849_v43, %v355_v53  ;;  %v622_v58 = vadd.f32 %v621_v54, %v620_v48  ;;  %v646_v59 = vadd.f32 %v645_v55, %v644_v49 }
  0xee   :  { %v623_v60 = vpop.f32.mrf.mxu0  ;;  %v647_v61 = vpop.f32.mrf.mxu1 }
  0xef   :  { %v386_v0 = vmax.f32 %v370_v56, 0.0  ;;  %v394_v1 = vmax.f32 %v378_v57, 0.0  ;;  %v348_v2 = vmul.f32 %v622_v58, %v842_v35  ;;  %v356_v3 = vmul.f32 %v646_v59, %v842_v35 }
  0xf0   :  { %v624_v4 = vpop.f32.mrf.mxu0  ;;  %v648_v5 = vpop.f32.mrf.mxu1 }
  0xf1   :  { %v554_v6 = vpack.c.bf16 %v386_v0, %v385_v62  ;;  %v574_v7 = vpack.c.bf16 %v394_v1, %v393_v63  ;;  %v625_v8 = vadd.f32 %v624_v4, %v623_v60  ;;  %v649_v9 = vadd.f32 %v648_v5, %v647_v61 }
  0xf2   :  { %v626_v10 = vpop.f32.mrf.mxu0  ;;  %v650_v11 = vpop.f32.mrf.mxu1  ;;  %v371_v12 = vadd.f32 %v849_v43, %v348_v2  ;;  %v379_v13 = vadd.f32 %v849_v43, %v356_v3 }
  0xf3   :  { %555 = vst [vmem:[%s909_s4] sm:$0xff] %v554_v6   ;;  %594 = vst [vmem:[%s909_s4 + $0x20] sm:$0xff] %v574_v7   ;;  %v349_v14 = vmul.f32 %v625_v8, %v842_v35  ;;  %v357_v15 = vmul.f32 %v649_v9, %v842_v35 }
  0xf4   :  { %v627_v16 = vpop.f32.mrf.mxu0  ;;  %v651_v17 = vpop.f32.mrf.mxu1  ;;  %v387_v26 = vmax.f32 %v371_v12, 0.0  ;;  %v395_v27 = vmax.f32 %v379_v13, 0.0 }
  0xf5   :  { %v628_v18 = vadd.f32 %v627_v16, %v626_v10  ;;  %v652_v19 = vadd.f32 %v651_v17, %v650_v11  ;;  %v372_v20 = vadd.f32 %v849_v43, %v349_v14  ;;  %v380_v21 = vadd.f32 %v849_v43, %v357_v15 }
  0xf6   :  { %v629_v22 = vpop.f32.mrf.mxu0  ;;  %v653_v23 = vpop.f32.mrf.mxu1 }
  0xf7   :  { %v350_v24 = vmul.f32 %v628_v18, %v842_v35  ;;  %v358_v25 = vmul.f32 %v652_v19, %v842_v35  ;;  %v388_v28 = vmax.f32 %v372_v20, 0.0  ;;  %v396_v29 = vmax.f32 %v380_v21, 0.0 }
  0xf8   :  { %v630_v30 = vpop.f32.mrf.mxu0  ;;  %v654_v31 = vpop.f32.mrf.mxu1 }
  0xf9   :  { %v631_v32 = vadd.f32 %v630_v30, %v629_v22  ;;  %v655_v33 = vadd.f32 %v654_v31, %v653_v23  ;;  %v559_v34 = vpack.c.bf16 %v388_v28, %v387_v26  ;;  %v579_v36 = vpack.c.bf16 %v396_v29, %v395_v27 }
  0xfa   :  { %v632_v37 = vpop.f32.mrf.mxu0  ;;  %v656_v38 = vpop.f32.mrf.mxu1  ;;  %v373_v39 = vadd.f32 %v849_v43, %v350_v24  ;;  %v381_v40 = vadd.f32 %v849_v43, %v358_v25 }
  0xfb   :  { %v351_v41 = vmul.f32 %v631_v32, %v842_v35  ;;  %v359_v42 = vmul.f32 %v655_v33, %v842_v35  ;;  %591 = vst [vmem:[%s909_s4 + $0x8] sm:$0xff] %v559_v34   ;;  %595 = vst [vmem:[%s909_s4 + $0x28] sm:$0xff] %v579_v36  }
  0xfc   :  { %v633_v44 = vpop.f32.mrf.mxu0  ;;  %v657_v45 = vpop.f32.mrf.mxu1  ;;  %v389_v52 = vmax.f32 %v373_v39, 0.0  ;;  %v397_v53 = vmax.f32 %v381_v40, 0.0 }
  0xfd   :  { %v374_v46 = vadd.f32 %v849_v43, %v351_v41  ;;  %v382_v47 = vadd.f32 %v849_v43, %v359_v42  ;;  %v634_v48 = vadd.f32 %v633_v44, %v632_v37  ;;  %v658_v49 = vadd.f32 %v657_v45, %v656_v38 }
  0xfe   :  { %v635_v50 = vpop.f32.mrf.mxu0  ;;  %v659_v51 = vpop.f32.mrf.mxu1 }
  0xff   :  { %v390_v54 = vmax.f32 %v374_v46, 0.0  ;;  %v398_v55 = vmax.f32 %v382_v47, 0.0  ;;  %v352_v56 = vmul.f32 %v634_v48, %v842_v35  ;;  %v360_v57 = vmul.f32 %v658_v49, %v842_v35 }
 0x100   :  { %v636_v58 = vpop.f32.mrf.mxu0  ;;  %v660_v59 = vpop.f32.mrf.mxu1 }
 0x101   :  { %v564_v60 = vpack.c.bf16 %v390_v54, %v389_v52  ;;  %v584_v61 = vpack.c.bf16 %v398_v55, %v397_v53  ;;  %v637_v62 = vadd.f32 %v636_v58, %v635_v50  ;;  %v661_v63 = vadd.f32 %v660_v59, %v659_v51 }
 0x102   :  { %v375_v0 = vadd.f32 %v849_v43, %v352_v56  ;;  %v383_v1 = vadd.f32 %v849_v43, %v360_v57 }
 0x103   :  { %592 = vst [vmem:[%s909_s4 + $0x10] sm:$0xff] %v564_v60   ;;  %596 = vst [vmem:[%s909_s4 + $0x30] sm:$0xff] %v584_v61   ;;  %v353_v2 = vmul.f32 %v637_v62, %v842_v35  ;;  %v361_v3 = vmul.f32 %v661_v63, %v842_v35 }
 0x104   :  { %v391_v6 = vmax.f32 %v375_v0, 0.0  ;;  %v399_v7 = vmax.f32 %v383_v1, 0.0 }
 0x105   :  { %v376_v4 = vadd.f32 %v849_v43, %v353_v2  ;;  %v384_v5 = vadd.f32 %v849_v43, %v361_v3 }
 0x107   :  { %v392_v8 = vmax.f32 %v376_v4, 0.0  ;;  %v400_v9 = vmax.f32 %v384_v5, 0.0 }
 0x109   :  { %v569_v10 = vpack.c.bf16 %v392_v8, %v391_v6  ;;  %v589_v11 = vpack.c.bf16 %v400_v9, %v399_v7 }
 0x10b   :  { %593 = vst [vmem:[%s909_s4 + $0x18] sm:$0xff] %v569_v10   ;;  %597 = vst [vmem:[%s909_s4 + $0x38] sm:$0xff] %v589_v11  }

</bundles_post_ra>
